<compile_context>
chip_gen: v6e
topology: v6e:2x2x1
jax: 0.10.0
libtpu: 0.0.40
codegen_flags: <defaults>
</compile_context>

<pallas_src>
import math

import jax
import jax.numpy as jnp
from jax.experimental import pallas as pl
from jax.experimental.pallas import tpu as pltpu

IN_DIM = 512
HID = 512
N_HIDDEN_LAYERS = 4
BN_EPS = 1e-5


def domain_classifier_kernel(x_ref, w_ref, g_ref, beta_ref, w5_ref, b5_ref,
                             o_ref, h_ref):
    """One grid step == one hidden block (Linear -> BN(train) -> ReLU).

    The grid axis pipelines the per-layer (512,512) bf16 weight DMA against the
    previous layer's matmul + BN; the activation `h` is carried across steps in
    a VMEM scratch. The Linear(512,1) head is fused into the last step as a
    VPU multiply + lane reduce (avoids a 1-lane-wide MXU matmul).

    x_ref    : (B, 512)      input activations (resident, constant block)
    w_ref    : (1, 512, 512) this layer's weight, bf16, (in, out) layout
    g_ref    : (1, 1, 512)   this layer's BatchNorm gamma
    beta_ref : (1, 1, 512)   this layer's BatchNorm beta
    w5_ref   : (1, 512)      final linear weight
    b5_ref   : (1, 1)        final linear bias
    o_ref    : (B, 1)        output (written on the last grid step only)
    h_ref    : (B, 512) f32  VMEM scratch carrying activations across steps
    """
    l = pl.program_id(0)

    @pl.when(l == 0)
    def _():
        h_ref[...] = x_ref[...].astype(jnp.float32)

    h = h_ref[...]                                      # (B, 512) f32 carry
    w = w_ref[0]                                        # (512, 512) bf16

    # Linear (bias omitted: training-mode BN subtracts the batch mean, which
    # cancels a per-feature constant bias exactly).
    z = jnp.dot(h.astype(jnp.bfloat16), w,
                preferred_element_type=jnp.float32)     # (B, 512) f32

    # BatchNorm1d (training mode): one-pass batch stats + folded affine FMA.
    mu = jnp.mean(z, axis=0, keepdims=True)                     # (1, 512)
    var = jnp.mean(z * z, axis=0, keepdims=True) - mu * mu      # biased var
    scale = g_ref[0] * jax.lax.rsqrt(var + BN_EPS)              # gamma/sqrt(v+eps)
    shift = beta_ref[0] - mu * scale
    h_new = jnp.maximum(z * scale + shift, 0.0)                 # BN + ReLU
    h_ref[...] = h_new

    # Final Linear(512, 1) fused into the last layer's step: VPU mul + reduce.
    @pl.when(l == pl.num_programs(0) - 1)
    def _():
        y = jnp.sum(h_new * w5_ref[...], axis=-1, keepdims=True) + b5_ref[...]
        o_ref[...] = y.astype(o_ref.dtype)


def domain_classifier_forward(x, ws, gammas, betas, w5, b5):
    B = x.shape[0]
    ws_bf16 = ws.astype(jnp.bfloat16)   # halve the dominant HBM byte traffic

    flops = 2 * B * HID * HID * N_HIDDEN_LAYERS + 2 * B * HID
    bytes_accessed = (ws_bf16.size * 2 + x.size * 4 + gammas.size * 4 +
                      betas.size * 4 + w5.size * 4 + b5.size * 4 + B * 4)

    return pl.pallas_call(
        domain_classifier_kernel,
        out_shape=jax.ShapeDtypeStruct((B, 1), jnp.float32),
        grid=(N_HIDDEN_LAYERS,),
        in_specs=[
            pl.BlockSpec((B, IN_DIM), lambda l: (0, 0)),        # x (resident)
            pl.BlockSpec((1, HID, HID), lambda l: (l, 0, 0)),   # per-layer W
            pl.BlockSpec((1, 1, HID), lambda l: (l, 0, 0)),     # per-layer gamma
            pl.BlockSpec((1, 1, HID), lambda l: (l, 0, 0)),     # per-layer beta
            pl.BlockSpec((1, HID), lambda l: (0, 0)),           # w5 (resident)
            pl.BlockSpec((1, 1), lambda l: (0, 0)),             # b5 (resident)
        ],
        out_specs=pl.BlockSpec((B, 1), lambda l: (0, 0)),
        scratch_shapes=[pltpu.VMEM((B, HID), jnp.float32)],     # h carry
        compiler_params=pltpu.CompilerParams(
            dimension_semantics=("arbitrary",),
        ),
        cost_estimate=pl.CostEstimate(
            flops=flops, transcendentals=0, bytes_accessed=bytes_accessed),
    )(x, ws_bf16, gammas, betas, w5, b5)


def init_params(key):
    """Deterministic PyTorch-style (uniform +-1/sqrt(fan_in)) init.

    Weights are pre-transposed to (in, out). Hidden-layer linear biases are not
    generated: under training-mode BatchNorm they cancel exactly and never
    affect the forward output.
    """
    keys = jax.random.split(key, N_HIDDEN_LAYERS + 2)

    bound = 1.0 / math.sqrt(IN_DIM)
    ws = jnp.stack([
        jax.random.uniform(keys[i], (IN_DIM, HID), jnp.float32, -bound, bound)
        for i in range(N_HIDDEN_LAYERS)
    ], axis=0)                                              # (4, 512, 512)

    gammas = jnp.ones((N_HIDDEN_LAYERS, 1, HID), jnp.float32)
    betas = jnp.zeros((N_HIDDEN_LAYERS, 1, HID), jnp.float32)

    w5 = jax.random.uniform(keys[-2], (1, HID), jnp.float32, -bound, bound)
    b5 = jax.random.uniform(keys[-1], (1, 1), jnp.float32, -bound, bound)
    return ws, gammas, betas, w5, b5


def reference_forward(x, ws, gammas, betas, w5, b5):
    """Pure-JAX reference mirroring the kernel arithmetic (bf16 weights,
    f32 accumulation, training-mode BN). Mathematically identical to the
    PyTorch module's training-mode forward (linear biases cancel under BN)."""
    ws_bf16 = ws.astype(jnp.bfloat16)
    h = x.astype(jnp.float32)
    for i in range(N_HIDDEN_LAYERS):
        z = jnp.dot(h.astype(jnp.bfloat16), ws_bf16[i],
                    preferred_element_type=jnp.float32)
        mu = jnp.mean(z, axis=0, keepdims=True)
        var = jnp.mean(z * z, axis=0, keepdims=True) - mu * mu
        z = (z - mu) * jax.lax.rsqrt(var + BN_EPS) * gammas[i] + betas[i]
        h = jnp.maximum(z, 0.0)
    return jnp.sum(h * w5, axis=-1, keepdims=True) + b5


if __name__ == "__main__":
    key = jax.random.PRNGKey(0)
    k_param, k_x = jax.random.split(key)

    B = 8  # batch statistics need B >= 2; 8 fills one f32 sublane tile
    x = jax.random.normal(k_x, (B, IN_DIM), dtype=jnp.float32)

    params = init_params(k_param)

    y = jax.block_until_ready(domain_classifier_forward(x, *params))
    y_ref = reference_forward(x, *params)

    assert y.shape == (B, 1)
    assert jnp.allclose(y, y_ref, atol=1e-3, rtol=1e-3), "mismatch vs reference"

    print("KERNEL_OK")
</pallas_src>

<mosaic_0001>
module attributes {stable_mosaic.version = 11 : i64} {
  func.func @domain_classifier_kernel(%arg0: i32, %arg1: memref<8x512xf32, #tpu.memory_space<vmem>>, %arg2: memref<1x512x512xbf16, #tpu.memory_space<vmem>>, %arg3: memref<1x1x512xf32, #tpu.memory_space<vmem>>, %arg4: memref<1x1x512xf32, #tpu.memory_space<vmem>>, %arg5: memref<1x512xf32, #tpu.memory_space<vmem>>, %arg6: memref<1x1xf32, #tpu.memory_space<vmem>>, %arg7: memref<8x1xf32, #tpu.memory_space<vmem>>, %arg8: memref<8x512xf32, #tpu.memory_space<vmem>>) attributes {dimension_semantics = [#tpu.dimension_semantics<arbitrary>], iteration_bounds = array<i64: 4>, scalar_prefetch = 0 : i64, scratch_operands = 1 : i64, tpu.core_type = #tpu.core_type<tc>, window_params = [{pipeline_mode = #tpu.pipeline_mode<synchronous>, transform_indices = @transform_0, window_bounds = array<i64: 8, 512>}, {transform_indices = @transform_1, window_bounds = array<i64: 1, 512, 512>}, {transform_indices = @transform_2, window_bounds = array<i64: 1, 1, 512>}, {transform_indices = @transform_3, window_bounds = array<i64: 1, 1, 512>}, {pipeline_mode = #tpu.pipeline_mode<synchronous>, transform_indices = @transform_4, window_bounds = array<i64: 1, 512>}, {pipeline_mode = #tpu.pipeline_mode<synchronous>, transform_indices = @transform_5, window_bounds = array<i64: 1, 1>}, {pipeline_mode = #tpu.pipeline_mode<synchronous>, transform_indices = @transform_6, window_bounds = array<i64: 8, 1>}]} {
    %c0_i32 = arith.constant 0 : i32
    %0 = arith.cmpi eq, %arg0, %c0_i32 : i32
    %1 = arith.extui %0 : i1 to i32
    %c0_i32_0 = arith.constant 0 : i32
    %2 = arith.cmpi ne, %1, %c0_i32_0 : i32
    scf.if %2 {
      %c0_20 = arith.constant 0 : index
      %c0_21 = arith.constant 0 : index
      %39 = vector.load %arg1[%c0_20, %c0_21] : memref<8x512xf32, #tpu.memory_space<vmem>>, vector<8x512xf32>
      %c0_22 = arith.constant 0 : index
      %c0_23 = arith.constant 0 : index
      %40 = vector.load %arg8[%c0_22, %c0_23] : memref<8x512xf32, #tpu.memory_space<vmem>>, vector<8x512xf32>
      tpu.vector_store %arg8[%c0_22, %c0_23], %39 {strides = array<i32>} : memref<8x512xf32, #tpu.memory_space<vmem>>, vector<8x512xf32>,
    } else {
    }
    %c0 = arith.constant 0 : index
    %c0_1 = arith.constant 0 : index
    %3 = vector.load %arg8[%c0, %c0_1] : memref<8x512xf32, #tpu.memory_space<vmem>>, vector<8x512xf32>
    %c0_2 = arith.constant 0 : index
    %c0_3 = arith.constant 0 : index
    %c0_4 = arith.constant 0 : index
    %4 = vector.load %arg2[%c0_2, %c0_3, %c0_4] : memref<1x512x512xbf16, #tpu.memory_space<vmem>>, vector<1x512x512xbf16>
    %5 = vector.shape_cast %4 : vector<1x512x512xbf16> to vector<512x512xbf16>
    %6 = arith.truncf %3 : vector<8x512xf32> to vector<8x512xbf16>
    %cst = arith.constant dense<0.000000e+00> : vector<8x512xf32>
    %7 = tpu.matmul %6, %5, %cst {dimension_numbers = #tpu.dot_dimension_numbers<[1], [0], [0], [1], [0, 0, 1, 1], [], []>} : vector<8x512xbf16>, vector<512x512xbf16>, vector<8x512xf32> -> vector<8x512xf32>
    %cst_5 = arith.constant dense<0.000000e+00> : vector<512xf32>
    %8 = vector.multi_reduction <add>, %7, %cst_5 [0] : vector<8x512xf32> to vector<512xf32>
    %9 = vector.shape_cast %8 : vector<512xf32> to vector<1x512xf32>
    %cst_6 = arith.constant 8.000000e+00 : f32
    %10 = vector.broadcast %cst_6 : f32 to vector<1x512xf32>
    %11 = arith.divf %9, %10 : vector<1x512xf32>
    %12 = arith.mulf %7, %7 : vector<8x512xf32>
    %cst_7 = arith.constant dense<0.000000e+00> : vector<512xf32>
    %13 = vector.multi_reduction <add>, %12, %cst_7 [0] : vector<8x512xf32> to vector<512xf32>
    %14 = vector.shape_cast %13 : vector<512xf32> to vector<1x512xf32>
    %cst_8 = arith.constant 8.000000e+00 : f32
    %15 = vector.broadcast %cst_8 : f32 to vector<1x512xf32>
    %16 = arith.divf %14, %15 : vector<1x512xf32>
    %17 = arith.mulf %11, %11 : vector<1x512xf32>
    %18 = arith.subf %16, %17 : vector<1x512xf32>
    %c0_9 = arith.constant 0 : index
    %c0_10 = arith.constant 0 : index
    %c0_11 = arith.constant 0 : index
    %19 = vector.load %arg3[%c0_9, %c0_10, %c0_11] : memref<1x1x512xf32, #tpu.memory_space<vmem>>, vector<1x1x512xf32>
    %20 = vector.shape_cast %19 : vector<1x1x512xf32> to vector<1x512xf32>
    %cst_12 = arith.constant 9.99999974E-6 : f32
    %21 = vector.broadcast %cst_12 : f32 to vector<1x512xf32>
    %22 = arith.addf %18, %21 : vector<1x512xf32>
    %23 = math.rsqrt %22 : vector<1x512xf32>
    %24 = arith.mulf %20, %23 : vector<1x512xf32>
    %c0_13 = arith.constant 0 : index
    %c0_14 = arith.constant 0 : index
    %c0_15 = arith.constant 0 : index
    %25 = vector.load %arg4[%c0_13, %c0_14, %c0_15] : memref<1x1x512xf32, #tpu.memory_space<vmem>>, vector<1x1x512xf32>
    %26 = vector.shape_cast %25 : vector<1x1x512xf32> to vector<1x512xf32>
    %27 = arith.mulf %11, %24 : vector<1x512xf32>
    %28 = arith.subf %26, %27 : vector<1x512xf32>
    %29 = vector.broadcast %24 : vector<1x512xf32> to vector<8x512xf32>
    %30 = arith.mulf %7, %29 : vector<8x512xf32>
    %31 = vector.broadcast %28 : vector<1x512xf32> to vector<8x512xf32>
    %32 = arith.addf %30, %31 : vector<8x512xf32>
    %cst_16 = arith.constant 0.000000e+00 : f32
    %33 = vector.broadcast %cst_16 : f32 to vector<8x512xf32>
    %34 = arith.maximumf %32, %33 : vector<8x512xf32>
    %c0_17 = arith.constant 0 : index
    %c0_18 = arith.constant 0 : index
    %35 = vector.load %arg8[%c0_17, %c0_18] : memref<8x512xf32, #tpu.memory_space<vmem>>, vector<8x512xf32>
    tpu.vector_store %arg8[%c0_17, %c0_18], %34 {strides = array<i32>} : memref<8x512xf32, #tpu.memory_space<vmem>>, vector<8x512xf32>,
    %c3_i32 = arith.constant 3 : i32
    %36 = arith.cmpi eq, %arg0, %c3_i32 : i32
    %37 = arith.extui %36 : i1 to i32
    %c0_i32_19 = arith.constant 0 : i32
    %38 = arith.cmpi ne, %37, %c0_i32_19 : i32
    scf.if %38 {
      %c0_20 = arith.constant 0 : index
      %c0_21 = arith.constant 0 : index
      %39 = vector.load %arg5[%c0_20, %c0_21] : memref<1x512xf32, #tpu.memory_space<vmem>>, vector<1x512xf32>
      %40 = vector.broadcast %39 : vector<1x512xf32> to vector<8x512xf32>
      %41 = arith.mulf %34, %40 : vector<8x512xf32>
      %cst_22 = arith.constant dense<0.000000e+00> : vector<8xf32>
      %42 = vector.multi_reduction <add>, %41, %cst_22 [1] : vector<8x512xf32> to vector<8xf32>
      %43 = vector.shape_cast %42 : vector<8xf32> to vector<8x1xf32>
      %c0_23 = arith.constant 0 : index
      %c0_24 = arith.constant 0 : index
      %44 = vector.load %arg6[%c0_23, %c0_24] : memref<1x1xf32, #tpu.memory_space<vmem>>, vector<1x1xf32>
      %45 = vector.broadcast %44 : vector<1x1xf32> to vector<8x1xf32>
      %46 = arith.addf %43, %45 : vector<8x1xf32>
      %c0_25 = arith.constant 0 : index
      %c0_26 = arith.constant 0 : index
      %47 = vector.load %arg7[%c0_25, %c0_26] : memref<8x1xf32, #tpu.memory_space<vmem>>, vector<8x1xf32>
      tpu.vector_store %arg7[%c0_25, %c0_26], %46 {strides = array<i32>} : memref<8x1xf32, #tpu.memory_space<vmem>>, vector<8x1xf32>,
    } else {
    }
    return
  }
  func.func @transform_0(%arg0: i32) -> (i32, i32) {
    %c0_i32 = arith.constant 0 : i32
    %c0_i32_0 = arith.constant 0 : i32
    %c0_i32_1 = arith.constant 0 : i32
    return %c0_i32, %c0_i32_0 : i32, i32
  }
  func.func @transform_1(%arg0: i32) -> (i32, i32, i32) {
    %c0_i32 = arith.constant 0 : i32
    %c0_i32_0 = arith.constant 0 : i32
    %c0_i32_1 = arith.constant 0 : i32
    return %arg0, %c0_i32, %c0_i32_0 : i32, i32, i32
  }
  func.func @transform_2(%arg0: i32) -> (i32, i32, i32) {
    %c0_i32 = arith.constant 0 : i32
    %c0_i32_0 = arith.constant 0 : i32
    %c0_i32_1 = arith.constant 0 : i32
    return %arg0, %c0_i32, %c0_i32_0 : i32, i32, i32
  }
  func.func @transform_3(%arg0: i32) -> (i32, i32, i32) {
    %c0_i32 = arith.constant 0 : i32
    %c0_i32_0 = arith.constant 0 : i32
    %c0_i32_1 = arith.constant 0 : i32
    return %arg0, %c0_i32, %c0_i32_0 : i32, i32, i32
  }
  func.func @transform_4(%arg0: i32) -> (i32, i32) {
    %c0_i32 = arith.constant 0 : i32
    %c0_i32_0 = arith.constant 0 : i32
    %c0_i32_1 = arith.constant 0 : i32
    return %c0_i32, %c0_i32_0 : i32, i32
  }
  func.func @transform_5(%arg0: i32) -> (i32, i32) {
    %c0_i32 = arith.constant 0 : i32
    %c0_i32_0 = arith.constant 0 : i32
    %c0_i32_1 = arith.constant 0 : i32
    return %c0_i32, %c0_i32_0 : i32, i32
  }
  func.func @transform_6(%arg0: i32) -> (i32, i32) {
    %c0_i32 = arith.constant 0 : i32
    %c0_i32_0 = arith.constant 0 : i32
    %c0_i32_1 = arith.constant 0 : i32
    return %c0_i32, %c0_i32_0 : i32, i32
  }
}

</mosaic_0001>

<bundles_post_ra>
// kernel: tpu_custom_call.1
= control target key start
LH: loop header
LB: loop body
LE: loop exit
PB: predicated region body
PF: predicated region fallthrough
CT: control target
= control target key end

     0   :  { %s2722_s0 = inlined_call_operand.hbm [shape: f32[8,512], index: 0, kind: input, shape index: {}]   ;;  %s2723_s1 = inlined_call_operand.hbm [shape: bf16[4,512,512], index: 1, kind: input, shape index: {}]   ;;  %s2724_s2 = inlined_call_operand.hbm [shape: f32[4,1,512], index: 2, kind: input, shape index: {}]   ;;  %s2725_s3 = inlined_call_operand.hbm [shape: f32[4,1,512], index: 3, kind: input, shape index: {}]   ;;  %s2726_s4 = inlined_call_operand.hbm [shape: f32[1,512], index: 4, kind: input, shape index: {}]   ;;  %s2727_s5 = inlined_call_operand.<no memory space> [shape: f32[1,1], index: 5, kind: input, shape index: {}]   ;;  %s2728_s6 = inlined_call_operand.vmem [shape: f32[8,1], index: 6, kind: output, shape index: {}]  }
   0x1   :  { %v11_v0 = vstv %s2727_s5 }
   0x2   :  { %12 = vst [vmem:[#allocation3] sm:$0x1] %v11_v0 }
   0x3   :  { %13 = vsyncpa [#allocation5], 0 }
   0x4   :  { %14 = vsyncpa [#allocation7], 0 }
   0x5   :  { %16 = vsyncpa [#allocation7 + $0x1], 0 }
   0x6   :  { %17 = vsyncpa [#allocation10], 0 }
   0x7   :  { %19 = vsyncpa [#allocation10 + $0x1], 0  ;;  %s2317_s23 = smov 0   ;;  %s2319_s24 = smov 0  }
   0x8   :  { %s2321_s25 = smov 0   ;;  %s2323_s26 = smov 0  }
   0x9 LB: > { %s2336_s5 = sadd.s32 4294967295, %s2269_s26   ;;  %s2339_s27 = sadd.s32 1, %s2269_s26   ;;  %s2269_s26 = sphi %s2323_s26, %s2755_s26   ;;  %s2265_s25 = sphi %s2321_s25, %s2754_s25   ;;  %s2261_s24 = sphi %s2319_s24, %s2753_s24   ;;  %s2257_s23 = sphi %s2317_s23, %s2752_s23  }
   0xa   : > { %s50_s28 = ssub.s32 %s2269_s26, %s2339_s27  ;;  %s53_s29 = sadd.s32 1, %s2265_s25 }
   0xb   : > { %p51_p0 = scmp.eq.s32.totalorder %s50_s28, 0  ;;  %p60_p1 = scmp.ne.s32.totalorder %s2265_s25, %s2261_s24 }
   0xc   : > { %p61_p2 = scmp.eq.s32.totalorder %s2269_s26, 0  ;;  %p66_p3 = scmp.ne.s32.totalorder %s2261_s24, %s2257_s23 }
   0xd   : > { %s2349_s30 = scalar_select %p51_p0, %s2265_s25, %s53_s29  }
   0xe   : > { %p2351_p4 = por %p61_p2, %p60_p1  ;;  %p2729_p5 = scmp.eq.s32.totalorder %s2336_s5, 0 }
   0xf   : > { %p1659_p6 = scmp.ge.s32.totalorder %s2269_s26, 1  ;;  %p192_p7 = scmp.lt.s32.totalorder %s2269_s26, 5 }
  0x10   : > { %p2360_p8 = por %p2729_p5, %p66_p3  ;;  %s2271_s10 = smov [#allocation11]  }
  0x11   : > { %p2365_p10 = pnand %p1659_p6, %p192_p7  ;;  %s216_s11 = sshll.u32 %s2271_s10, 4  ;;  %s217_s11 = int_to_ptr.vmem [resolvable:$true] %s216_s11 }
  0x12   : > { %s2737_s8 = scalar_select %p2360_p8, 1, 0 }
  0x13   : > { %s2738_s9 = scalar_select %p2365_p10, 1, 0 }
  0x14   : > { %p1828_p11 = pneg %p2365_p10  ;;  %p1847_p12 = scmp.lt.s32.totalorder %s2269_s26, 4 }
  0x15   : > { %s2735_s12 = sand.u32 1, %s2269_s26   ;;  %s232_s15 = sand.u32 1, %s2265_s25  }
  0x16   : > { %p2375_p13 = pnand %p1828_p11, %p2729_p5  ;;  %p2381_p0 = pnand %p1847_p12, %p2351_p4 }
  0x17   : > { %s1663_s16 = sshll.u32 %s232_s15, 10  ;;  %s2098_s17 = scalar_lea.vmem %s217_s11, 64 }
  0x18   : > { %s2739_s13 = scalar_select %p2375_p13, 1, 0 }
  0x19   : > { %p2730_p1 = pneg %p2375_p13  ;;  %p2099_p2 = scmp.ne.s32.totalorder %s217_s11, %s2098_s17 }
  0x1a   : > { %p2106_p7 = scmp.lt.s32.totalorder %s217_s11, %s217_s11  ;;  %p2107_p11 = scmp.lt.s32.totalorder %s2098_s17, %s2098_s17 }
  0x1b   : > { %p2101_p3 = pnand %p2099_p2, %p2730_p1 }
  0x1c   : > { %p2108_p9 = por %p2107_p11, %p2106_p7 }
  0x1d   : > { %p2102_p6 = pneg %p2101_p3 }
  0x1f   : > { %p2109_p5 = pnand %p2108_p9, %p2102_p6 }
  0x21   : > { %2112 = shalt.err (!%p2109_p5)
}
  0x22   : > { %1834 = dma.hbm_to_vmem [thread:$0]  (!%p2375_p13), %s2726_s4, 64, %s217_s11, [#allocation10]  }
  0x23   : > { %s1811_s20 = sshll.u32 %s2269_s26, 14  ;;  %s234_s21 = scalar_lea.vmem [#allocation6], %s1663_s16 }
  0x24   : > { %s241_s22 = sshll.u32 %s234_s21, 4  ;;  %s2402_s29 = scalar_lea.hbm %s2723_s1, %s1811_s20  ;;  %s2404_s22 = int_to_ptr.vmem [resolvable:$true] %s241_s22 }
  0x25   : > { %s2408_s7 = scalar_lea.sflag [#allocation7], %s2735_s12  ;;  %s2113_s10 = scalar_lea.hbm %s2402_s29, 16384 }
  0x26   : > { %p2114_p4 = scmp.ne.s32.totalorder %s2402_s29, %s2113_s10  ;;  %p2414_p5 = pneg %p2381_p0 }
  0x27   : > { %s2118_s18 = scalar_lea.hbm %s2723_s1, 65536  ;;  %p2119_p2 = scmp.lt.s32.totalorder %s2402_s29, %s2723_s1 }
  0x28   : > { %p2116_p9 = pnand %p2414_p5, %p2114_p4  ;;  %p2120_p3 = scmp.lt.s32.totalorder %s2118_s18, %s2113_s10 }
  0x2a   : > { %p2117_p12 = pneg %p2116_p9  ;;  %p2121_p6 = por %p2120_p3, %p2119_p2 }
  0x2c   : > { %p2122_p7 = pnand %p2121_p6, %p2117_p12 }
  0x2e   : > { %2125 = shalt.err (!%p2122_p7)
}
  0x2f   : > { %s2126_s21 = scalar_lea.vmem %s2404_s22, 16384  ;;  %s2272_s23 = smov [#allocation6]  }
  0x30   : > { %p2127_p11 = scmp.ne.s32.totalorder %s2404_s22, %s2126_s21  ;;  %s2131_s28 = sshll.u32 %s2272_s23, 4  ;;  %s2132_s28 = int_to_ptr.vmem [resolvable:$false] %s2131_s28 }
  0x31   : > { %s2133_s16 = scalar_lea.vmem %s2132_s28, 32768  ;;  %p2134_p1 = scmp.lt.s32.totalorder %s2404_s22, %s2132_s28 }
  0x32   : > { %p2129_p4 = pnand %p2127_p11, %p2414_p5  ;;  %p2135_p8 = scmp.lt.s32.totalorder %s2133_s16, %s2126_s21 }
  0x34   : > { %p2130_p9 = pneg %p2129_p4  ;;  %p2136_p10 = por %p2135_p8, %p2134_p1 }
  0x36   : > { %p2137_p13 = pnand %p2136_p10, %p2130_p9 }
  0x38   : > { %2140 = shalt.err (!%p2137_p13)
}
  0x39   : > { %s2273_s10 = smov 256   ;;  %s2274_s17 = smov 16  }
  0x3a   : > { %1838 = dma.hbm_to_vmem [thread:$0]  (!%p2381_p0), %s2402_s29, 16384, %s2404_s22, %s2408_s7, %s2273_s10, %s2273_s10, %s2274_s17  }
  0x3b   : > { %s2439_s18 = sshll.u32 %s232_s15, 2  ;;  %s2275_s19 = smov [#allocation4]  }
  0x3c   : > { %s205_s20 = sshll.u32 %s2275_s19, 4  ;;  %s1812_s21 = sshll.u32 %s2269_s26, 6  ;;  %s206_s20 = int_to_ptr.vmem [resolvable:$true] %s205_s20 }
  0x3d   : > { %s2152_s23 = scalar_lea.vmem %s206_s20, 512  ;;  %p2742_p10 = scmp.ne.s32.totalorder %s2739_s13, 0 }
  0x3e   : > { %p2153_p8 = scmp.ne.s32.totalorder %s206_s20, %s2152_s23  ;;  %p2160_p2 = scmp.lt.s32.totalorder %s206_s20, %s206_s20 }
  0x3f   : > { %p2743_p13 = pneg %p2742_p10  ;;  %p2161_p3 = scmp.lt.s32.totalorder %s2152_s23, %s2152_s23 }
  0x41   : > { %p2155_p1 = pnand %p2153_p8, %p2743_p13  ;;  %p2162_p6 = por %p2161_p3, %p2160_p2 }
  0x43   : > { %p2156_p12 = pneg %p2155_p1 }
  0x45   : > { %p2163_p7 = pnand %p2162_p6, %p2156_p12 }
  0x47   : > { %2166 = shalt.err (!%p2163_p7)
}
  0x48   : > { %1831 = dma.hbm_to_vmem [thread:$0]  (!%p2742_p10), %s2722_s0, 512, %s206_s20, [#allocation5]  }
  0x49   : > { %s261_s16 = scalar_lea.hbm %s2724_s2, %s1812_s21  ;;  %s255_s10 = scalar_lea.vmem [#allocation8], %s2439_s18 }
  0x4a   : > { %s263_s17 = sshll.u32 %s255_s10, 4  ;;  %s2167_s19 = scalar_lea.hbm %s261_s16, 64  ;;  %s264_s17 = int_to_ptr.vmem [resolvable:$true] %s263_s17 }
  0x4b   : > { %p2168_p11 = scmp.ne.s32.totalorder %s261_s16, %s2167_s19  ;;  %s2172_s22 = scalar_lea.hbm %s2724_s2, 256 }
  0x4c   : > { %p2173_p8 = scmp.lt.s32.totalorder %s261_s16, %s2724_s2  ;;  %p2174_p10 = scmp.lt.s32.totalorder %s2172_s22, %s2167_s19 }
  0x4d   : > { %p2170_p4 = pnand %p2168_p11, %p2414_p5 }
  0x4e   : > { %p2175_p13 = por %p2174_p10, %p2173_p8 }
  0x4f   : > { %p2171_p9 = pneg %p2170_p4 }
  0x51   : > { %p2176_p1 = pnand %p2175_p13, %p2171_p9 }
  0x53   : > { %2179 = shalt.err (!%p2176_p1)
}
  0x54   : > { %s2180_s20 = scalar_lea.vmem %s264_s17, 64  ;;  %s2276_s29 = smov [#allocation8]  }
  0x55   : > { %p2181_p12 = scmp.ne.s32.totalorder %s264_s17, %s2180_s20  ;;  %s2185_s28 = sshll.u32 %s2276_s29, 4  ;;  %s2186_s28 = int_to_ptr.vmem [resolvable:$false] %s2185_s28 }
  0x56   : > { %s2187_s10 = scalar_lea.vmem %s2186_s28, 128  ;;  %p2188_p6 = scmp.lt.s32.totalorder %s264_s17, %s2186_s28 }
  0x57   : > { %p2183_p2 = pnand %p2181_p12, %p2414_p5  ;;  %p2189_p7 = scmp.lt.s32.totalorder %s2187_s10, %s2180_s20 }
  0x59   : > { %p2184_p3 = pneg %p2183_p2  ;;  %p2190_p11 = por %p2189_p7, %p2188_p6 }
  0x5b   : > { %p2191_p4 = pnand %p2190_p11, %p2184_p3 }
  0x5d   : > { %2194 = shalt.err (!%p2191_p4)
}
  0x5e   : > { %1841 = dma.hbm_to_vmem [thread:$0]  (!%p2381_p0), %s261_s16, 64, %s264_s17, %s2408_s7  }
  0x5f   : > { %s2474_s13 = scalar_lea.hbm %s2725_s3, %s1812_s21  ;;  %s274_s23 = scalar_lea.vmem [#allocation9], %s2439_s18 }
  0x60   : > { %s282_s22 = sshll.u32 %s274_s23, 4  ;;  %s2744_s15 = sand.u32 1, %s2269_s26   ;;  %s283_s22 = int_to_ptr.vmem [resolvable:$true] %s282_s22 }
  0x61   : > { %s271_s20 = scalar_lea.sflag [#allocation10], %s2744_s15  ;;  %s2195_s29 = scalar_lea.hbm %s2474_s13, 64 }
  0x62   : > { %p2196_p9 = scmp.ne.s32.totalorder %s2474_s13, %s2195_s29  ;;  %s2200_s17 = scalar_lea.hbm %s2725_s3, 256 }
  0x63   : > { %p2201_p13 = scmp.lt.s32.totalorder %s2474_s13, %s2725_s3  ;;  %p2202_p1 = scmp.lt.s32.totalorder %s2200_s17, %s2195_s29 }
  0x64   : > { %p2198_p8 = pnand %p2196_p9, %p2414_p5 }
  0x65   : > { %p2203_p12 = por %p2202_p1, %p2201_p13 }
  0x66   : > { %p2199_p10 = pneg %p2198_p8 }
  0x68   : > { %p2204_p2 = pnand %p2203_p12, %p2199_p10 }
  0x6a   : > { %2207 = shalt.err (!%p2204_p2)
}
  0x6b   : > { %s2208_s18 = scalar_lea.vmem %s283_s22, 64  ;;  %s2277_s26 = smov [#allocation9]  }
  0x6c   : > { %p2209_p3 = scmp.ne.s32.totalorder %s283_s22, %s2208_s18  ;;  %s2213_s10 = sshll.u32 %s2277_s26, 4  ;;  %s2214_s10 = int_to_ptr.vmem [resolvable:$false] %s2213_s10 }
  0x6d   : > { %s2215_s12 = scalar_lea.vmem %s2214_s10, 128  ;;  %p2216_p11 = scmp.lt.s32.totalorder %s283_s22, %s2214_s10 }
  0x6e   : > { %p2211_p6 = pnand %p2209_p3, %p2414_p5  ;;  %p2217_p4 = scmp.lt.s32.totalorder %s2215_s12, %s2208_s18 }
  0x70   : > { %p2212_p7 = pneg %p2211_p6  ;;  %p2218_p9 = por %p2217_p4, %p2216_p11 }
  0x72   : > { %p2219_p8 = pnand %p2218_p9, %p2212_p7 }
  0x74   : > { %2222 = shalt.err (!%p2219_p8)
}
  0x75   : > { %1844 = dma.hbm_to_vmem [thread:$0]  (!%p2381_p0), %s2474_s13, 64, %s283_s22, %s271_s20  }
  0x76   : > { %p2745_p10 = scmp.ne.s32.totalorder %s2738_s9, 0 }
  0x77   : > { %p2746_p13 = scmp.eq.s32.totalorder (!%p2745_p10), %s2336_s5, 0 }
  0x78   : > { %291 = sbr.rel (%p2745_p10) target bundleno = 692 (0x2b4), region = 44 }
  0x7d   : > { %2240 = dma.done.wait (%p2746_p13), [#allocation5], 512   ;;  %p2747_p5 = pmov %p2746_p13 }
  0x7e   : > { %s297_s11 = sand.u32 1, %s2336_s5   ;;  %s299_s19 = sand.u32 1, %s2261_s24  }
  0x7f   : > { %2242 = vsyncadd (%p2747_p5), [#allocation5], 4294966784  ;;  %s1674_s23 = sshll.u32 %s299_s19, 10  ;;  %s298_s15 = scalar_lea.sflag [#allocation7], %s297_s11 }
  0x80   : > { %s2503_s29 = scalar_lea.vmem [#allocation6], %s1674_s23  ;;  %p2748_p1 = scmp.ne.s32.totalorder %s2737_s8, 0 }
  0x82   : > { %2244 = dma.done.wait (%p2748_p1), %s298_s15, 16448  }
  0x83   : > { %2246 = vsyncadd (%p2748_p1), %s298_s15, 4294950848  ;;  %s2509_s9 = sshll.u32 %s299_s19, 2  ;;  %s316_s13 = scalar_lea.sflag [#allocation10], %s297_s11 }
  0x84   : > { %s310_s14 = scalar_lea.vmem [#allocation8], %s2509_s9  ;;  %s319_s22 = scalar_lea.vmem [#allocation9], %s2509_s9 }
  0x85   : > { %2248 = dma.done.wait (%p2748_p1), %s316_s13, 64  }
  0x86   : > { %2250 = vsyncadd (%p2748_p1), %s316_s13, 4294967232  ;;  %p2749_p0 = pmov %p2747_p5 }
  0x88   : > { %2252 = dma.done.wait (%p2749_p0), [#allocation10], 64   ;;  %p2750_p12 = pmov %p2749_p0 }
  0x89   : > { %p2751_p2 = scmp.ne.s32.totalorder %s2336_s5, 0 }
  0x8a   : > { %2254 = vsyncadd (%p2750_p12), [#allocation10], 4294967232 }
  0x8b   : > { %360 = sbr.rel (%p2751_p2) target bundleno = 147 (0x93), region = 68 }
  0x90   : > { %v361_v1 = vld [vmem:[#allocation4] sm:$0xff]  ;;  %v362_v2 = vld [vmem:[#allocation4 + $0x8] sm:$0xff]  ;;  %v363_v3 = vld [vmem:[#allocation4 + $0x10] sm:$0xff] }
  0x91   : > { %365 = vst [vmem:[#allocation2 + $0x10] sm:$0xff] %v361_v1  ;;  %366 = vst [vmem:[#allocation2] sm:$0xff] %v362_v2  ;;  %v364_v4 = vld [vmem:[#allocation4 + $0x18] sm:$0xff] }
  0x92   : > { %367 = vst [vmem:[#allocation2 + $0x18] sm:$0xff] %v363_v3  ;;  %368 = vst [vmem:[#allocation2 + $0x8] sm:$0xff] %v364_v4 }
  0x93 PF: > { %v1887_v5 = vld [vmem:[%s2503_s29 + $0xe4] ss:$16 sps:$4 sm:$0xff]   ;;  %v1891_v7 = vld [vmem:[%s2503_s29 + $0xe0] ss:$16 sps:$4 sm:$0xff]   ;;  %p1807_p3 = scmp.ne.s32.totalorder %s2336_s5, 3 }
  0x94   : > { %v1889_v6 = vld [vmem:[%s2503_s29 + $0x2e4] ss:$16 sps:$4 sm:$0xff]   ;;  %1145 = vmatprep.subr.bf16.mxu0 %v1887_v5  ;;  %v1892_v8 = vld [vmem:[%s2503_s29 + $0x2e0] ss:$16 sps:$4 sm:$0xff]  }
  0x95   : > { %1186 = vmatprep.subr.bf16.mxu1 %v1889_v6  ;;  %v1893_v9 = vld [vmem:[%s2503_s29 + $0xc4] ss:$16 sps:$4 sm:$0xff]   ;;  %1146 = vmatpush1.bf16.msra.mxu0 %v1891_v7  ;;  %v1897_v11 = vld [vmem:[%s2503_s29 + $0xc0] ss:$16 sps:$4 sm:$0xff]  }
  0x96   : > { %1187 = vmatpush1.bf16.msra.mxu1 %v1892_v8  ;;  %v1895_v10 = vld [vmem:[%s2503_s29 + $0x2c4] ss:$16 sps:$4 sm:$0xff]   ;;  %1147 = vmatprep.subr.bf16.mxu0 %v1893_v9  ;;  %v1898_v12 = vld [vmem:[%s2503_s29 + $0x2c0] ss:$16 sps:$4 sm:$0xff]  }
  0x97   : > { %1188 = vmatprep.subr.bf16.mxu1 %v1895_v10  ;;  %v1899_v13 = vld [vmem:[%s2503_s29 + $0xa4] ss:$16 sps:$4 sm:$0xff]   ;;  %v1903_v15 = vld [vmem:[%s2503_s29 + $0xa0] ss:$16 sps:$4 sm:$0xff]  }
  0x98   : > { %v1901_v14 = vld [vmem:[%s2503_s29 + $0x2a4] ss:$16 sps:$4 sm:$0xff]   ;;  %v1904_v16 = vld [vmem:[%s2503_s29 + $0x2a0] ss:$16 sps:$4 sm:$0xff]  }
  0x99   : > { %1148 = vmatpush1.bf16.msra.mxu0 %v1897_v11  ;;  %v1905_v17 = vld [vmem:[%s2503_s29 + $0x84] ss:$16 sps:$4 sm:$0xff]   ;;  %v1909_v19 = vld [vmem:[%s2503_s29 + $0x80] ss:$16 sps:$4 sm:$0xff]   ;;  %v1985_v11 = vld [vmem:[%s2503_s29 + $0xec] ss:$16 sps:$4 sm:$0xff]  }
  0x9a   : > { %1189 = vmatpush1.bf16.msra.mxu1 %v1898_v12  ;;  %1149 = vmatprep.subr.bf16.mxu0 %v1899_v13  ;;  %v1907_v18 = vld [vmem:[%s2503_s29 + $0x284] ss:$16 sps:$4 sm:$0xff]   ;;  %v1910_v20 = vld [vmem:[%s2503_s29 + $0x280] ss:$16 sps:$4 sm:$0xff]   ;;  %v1988_v12 = vld [vmem:[%s2503_s29 + $0x2ec] ss:$16 sps:$4 sm:$0xff]  }
  0x9b   : > { %1190 = vmatprep.subr.bf16.mxu1 %v1901_v14  ;;  %v1911_v21 = vld [vmem:[%s2503_s29 + $0x64] ss:$16 sps:$4 sm:$0xff]   ;;  %v1915_v23 = vld [vmem:[%s2503_s29 + $0x60] ss:$16 sps:$4 sm:$0xff]  }
  0x9c   : > { %v1913_v22 = vld [vmem:[%s2503_s29 + $0x264] ss:$16 sps:$4 sm:$0xff]   ;;  %v1916_v24 = vld [vmem:[%s2503_s29 + $0x260] ss:$16 sps:$4 sm:$0xff]  }
  0x9d   : > { %1150 = vmatpush1.bf16.msra.mxu0 %v1903_v15  ;;  %v1917_v25 = vld [vmem:[%s2503_s29 + $0x44] ss:$16 sps:$4 sm:$0xff]   ;;  %v1921_v27 = vld [vmem:[%s2503_s29 + $0x40] ss:$16 sps:$4 sm:$0xff]   ;;  %v1983_v15 = vld [vmem:[%s2503_s29 + $0xe8] ss:$16 sps:$4 sm:$0xff]  }
  0x9e   : > { %1191 = vmatpush1.bf16.msra.mxu1 %v1904_v16  ;;  %1151 = vmatprep.subr.bf16.mxu0 %v1905_v17  ;;  %v1919_v26 = vld [vmem:[%s2503_s29 + $0x244] ss:$16 sps:$4 sm:$0xff]   ;;  %v1922_v28 = vld [vmem:[%s2503_s29 + $0x240] ss:$16 sps:$4 sm:$0xff]   ;;  %v1986_v16 = vld [vmem:[%s2503_s29 + $0x2e8] ss:$16 sps:$4 sm:$0xff]  }
  0x9f   : > { %1192 = vmatprep.subr.bf16.mxu1 %v1907_v18  ;;  %v1923_v29 = vld [vmem:[%s2503_s29 + $0x24] ss:$16 sps:$4 sm:$0xff]   ;;  %v1927_v31 = vld [vmem:[%s2503_s29 + $0x20] ss:$16 sps:$4 sm:$0xff]   ;;  %v1991_v17 = vld [vmem:[%s2503_s29 + $0xcc] ss:$16 sps:$4 sm:$0xff]  }
  0xa0   : > { %v1925_v30 = vld [vmem:[%s2503_s29 + $0x224] ss:$16 sps:$4 sm:$0xff]   ;;  %v1928_v32 = vld [vmem:[%s2503_s29 + $0x220] ss:$16 sps:$4 sm:$0xff]   ;;  %v1994_v18 = vld [vmem:[%s2503_s29 + $0x2cc] ss:$16 sps:$4 sm:$0xff]  }
  0xa1   : > { %1152 = vmatpush1.bf16.msra.mxu0 %v1909_v19  ;;  %v1929_v33 = vld [vmem:[%s2503_s29 + $0x4] ss:$16 sps:$4 sm:$0xff]   ;;  %v1933_v35 = vld [vmem:[%s2503_s29] ss:$16 sps:$4 sm:$0xff]   ;;  %v1989_v19 = vld [vmem:[%s2503_s29 + $0xc8] ss:$16 sps:$4 sm:$0xff]  }
  0xa2   : > { %1193 = vmatpush1.bf16.msra.mxu1 %v1910_v20  ;;  %1153 = vmatprep.subr.bf16.mxu0 %v1911_v21  ;;  %v1931_v34 = vld [vmem:[%s2503_s29 + $0x204] ss:$16 sps:$4 sm:$0xff]   ;;  %v1934_v36 = vld [vmem:[%s2503_s29 + $0x200] ss:$16 sps:$4 sm:$0xff]   ;;  %v1992_v20 = vld [vmem:[%s2503_s29 + $0x2c8] ss:$16 sps:$4 sm:$0xff]  }
  0xa3   : > { %1194 = vmatprep.subr.bf16.mxu1 %v1913_v22  ;;  %v1935_v37 = vld [vmem:[%s2503_s29 + $0x1e4] ss:$16 sps:$4 sm:$0xff]   ;;  %v1939_v39 = vld [vmem:[%s2503_s29 + $0x1e0] ss:$16 sps:$4 sm:$0xff]   ;;  %v1997_v21 = vld [vmem:[%s2503_s29 + $0xac] ss:$16 sps:$4 sm:$0xff]  }
  0xa4   : > { %v1937_v38 = vld [vmem:[%s2503_s29 + $0x3e4] ss:$16 sps:$4 sm:$0xff]   ;;  %v1940_v40 = vld [vmem:[%s2503_s29 + $0x3e0] ss:$16 sps:$4 sm:$0xff]   ;;  %v2000_v22 = vld [vmem:[%s2503_s29 + $0x2ac] ss:$16 sps:$4 sm:$0xff]  }
  0xa5   : > { %1154 = vmatpush1.bf16.msra.mxu0 %v1915_v23  ;;  %v1941_v41 = vld [vmem:[%s2503_s29 + $0x1c4] ss:$16 sps:$4 sm:$0xff]   ;;  %v1945_v43 = vld [vmem:[%s2503_s29 + $0x1c0] ss:$16 sps:$4 sm:$0xff]   ;;  %v1995_v23 = vld [vmem:[%s2503_s29 + $0xa8] ss:$16 sps:$4 sm:$0xff]  }
  0xa6   : > { %1195 = vmatpush1.bf16.msra.mxu1 %v1916_v24  ;;  %1155 = vmatprep.subr.bf16.mxu0 %v1917_v25  ;;  %v1943_v42 = vld [vmem:[%s2503_s29 + $0x3c4] ss:$16 sps:$4 sm:$0xff]   ;;  %v1946_v44 = vld [vmem:[%s2503_s29 + $0x3c0] ss:$16 sps:$4 sm:$0xff]   ;;  %v1998_v24 = vld [vmem:[%s2503_s29 + $0x2a8] ss:$16 sps:$4 sm:$0xff]  }
  0xa7   : > { %1196 = vmatprep.subr.bf16.mxu1 %v1919_v26  ;;  %v1947_v45 = vld [vmem:[%s2503_s29 + $0x1a4] ss:$16 sps:$4 sm:$0xff]   ;;  %v1951_v47 = vld [vmem:[%s2503_s29 + $0x1a0] ss:$16 sps:$4 sm:$0xff]   ;;  %v2003_v25 = vld [vmem:[%s2503_s29 + $0x8c] ss:$16 sps:$4 sm:$0xff]  }
  0xa8   : > { %v1949_v46 = vld [vmem:[%s2503_s29 + $0x3a4] ss:$16 sps:$4 sm:$0xff]   ;;  %v1952_v48 = vld [vmem:[%s2503_s29 + $0x3a0] ss:$16 sps:$4 sm:$0xff]   ;;  %v2006_v26 = vld [vmem:[%s2503_s29 + $0x28c] ss:$16 sps:$4 sm:$0xff]  }
  0xa9   : > { %1156 = vmatpush1.bf16.msra.mxu0 %v1921_v27  ;;  %v1953_v49 = vld [vmem:[%s2503_s29 + $0x184] ss:$16 sps:$4 sm:$0xff]   ;;  %v1957_v52 = vld [vmem:[%s2503_s29 + $0x180] ss:$16 sps:$4 sm:$0xff]   ;;  %v2001_v27 = vld [vmem:[%s2503_s29 + $0x88] ss:$16 sps:$4 sm:$0xff]  }
  0xaa   : > { %1197 = vmatpush1.bf16.msra.mxu1 %v1922_v28  ;;  %1157 = vmatprep.subr.bf16.mxu0 %v1923_v29  ;;  %v1955_v50 = vld [vmem:[%s2503_s29 + $0x384] ss:$16 sps:$4 sm:$0xff]   ;;  %v1958_v53 = vld [vmem:[%s2503_s29 + $0x380] ss:$16 sps:$4 sm:$0xff]   ;;  %v2004_v28 = vld [vmem:[%s2503_s29 + $0x288] ss:$16 sps:$4 sm:$0xff]  }
  0xab   : > { %1198 = vmatprep.subr.bf16.mxu1 %v1925_v30  ;;  %v370_v51 = vld [vmem:[#allocation2] sm:$0xff]  ;;  %v372_v55 = vld [vmem:[#allocation2 + $0x8] sm:$0xff]  ;;  %v369_v9 = vld [vmem:[#allocation2 + $0x10] sm:$0xff] }
  0xac   : > { %v2571_v54 = vpack.c.bf16 %v370_v51, %v370_v51  ;;  %v1959_v56 = vld [vmem:[%s2503_s29 + $0x164] ss:$16 sps:$4 sm:$0xff]   ;;  %v504_v57 = vpack.c.bf16 %v372_v55, %v372_v55  ;;  %v1963_v59 = vld [vmem:[%s2503_s29 + $0x160] ss:$16 sps:$4 sm:$0xff]   ;;  %v2592_v13 = vpack.c.bf16 %v369_v9, %v369_v9  ;;  %v2009_v29 = vld [vmem:[%s2503_s29 + $0x6c] ss:$16 sps:$4 sm:$0xff]  }
  0xad   : > { %1158 = vmatpush1.bf16.msra.mxu0 %v1927_v31  ;;  %v1961_v58 = vld [vmem:[%s2503_s29 + $0x364] ss:$16 sps:$4 sm:$0xff]   ;;  %v1964_v60 = vld [vmem:[%s2503_s29 + $0x360] ss:$16 sps:$4 sm:$0xff]   ;;  %v2012_v30 = vld [vmem:[%s2503_s29 + $0x26c] ss:$16 sps:$4 sm:$0xff]  }
  0xae   : > { %1199 = vmatpush1.bf16.msra.mxu1 %v1928_v32  ;;  %1159 = vmatprep.subr.bf16.mxu0 %v1929_v33  ;;  %v1965_v61 = vld [vmem:[%s2503_s29 + $0x144] ss:$16 sps:$4 sm:$0xff]   ;;  %v1969_v63 = vld [vmem:[%s2503_s29 + $0x140] ss:$16 sps:$4 sm:$0xff]   ;;  %v2007_v31 = vld [vmem:[%s2503_s29 + $0x68] ss:$16 sps:$4 sm:$0xff]  }
  0xaf   : > { %1200 = vmatprep.subr.bf16.mxu1 %v1931_v34  ;;  %1177 = vmatprep.mubr.bf16.mxu0 %v2571_v54  ;;  %v1967_v62 = vld [vmem:[%s2503_s29 + $0x344] ss:$16 sps:$4 sm:$0xff]   ;;  %v1970_v0 = vld [vmem:[%s2503_s29 + $0x340] ss:$16 sps:$4 sm:$0xff]   ;;  %v2010_v32 = vld [vmem:[%s2503_s29 + $0x268] ss:$16 sps:$4 sm:$0xff]  }
  0xb0   : > { %1218 = vmatprep.mubr.bf16.mxu1 %v504_v57  ;;  %v1971_v1 = vld [vmem:[%s2503_s29 + $0x124] ss:$16 sps:$4 sm:$0xff]   ;;  %v1975_v3 = vld [vmem:[%s2503_s29 + $0x120] ss:$16 sps:$4 sm:$0xff]   ;;  %v2015_v33 = vld [vmem:[%s2503_s29 + $0x4c] ss:$16 sps:$4 sm:$0xff]  }
  0xb1   : > { %1160 = vmatpush1.bf16.msra.mxu0 %v1933_v35  ;;  %v1973_v2 = vld [vmem:[%s2503_s29 + $0x324] ss:$16 sps:$4 sm:$0xff]   ;;  %v1976_v4 = vld [vmem:[%s2503_s29 + $0x320] ss:$16 sps:$4 sm:$0xff]   ;;  %v2018_v34 = vld [vmem:[%s2503_s29 + $0x24c] ss:$16 sps:$4 sm:$0xff]  }
  0xb2   : > { %1201 = vmatpush1.bf16.msra.mxu1 %v1934_v36  ;;  %1161 = vmatprep.subr.bf16.mxu0 %v1935_v37  ;;  %v1977_v5 = vld [vmem:[%s2503_s29 + $0x104] ss:$16 sps:$4 sm:$0xff]   ;;  %v1981_v7 = vld [vmem:[%s2503_s29 + $0x100] ss:$16 sps:$4 sm:$0xff]   ;;  %v2013_v35 = vld [vmem:[%s2503_s29 + $0x48] ss:$16 sps:$4 sm:$0xff]  }
  0xb3   : > { %1202 = vmatprep.subr.bf16.mxu1 %v1937_v38  ;;  %v1979_v6 = vld [vmem:[%s2503_s29 + $0x304] ss:$16 sps:$4 sm:$0xff]   ;;  %v1982_v8 = vld [vmem:[%s2503_s29 + $0x300] ss:$16 sps:$4 sm:$0xff]   ;;  %v2016_v36 = vld [vmem:[%s2503_s29 + $0x248] ss:$16 sps:$4 sm:$0xff]  }
  0xb4   : > { %v371_v10 = vld [vmem:[#allocation2 + $0x18] sm:$0xff] }
  0xb5   : > { %1162 = vmatpush2.bf16.msra.mxu0 %v1939_v39  ;;  %v2594_v14 = vpack.c.bf16 %v371_v10, %v371_v10  ;;  %v2021_v37 = vld [vmem:[%s2503_s29 + $0x2c] ss:$16 sps:$4 sm:$0xff]   ;;  %v2019_v39 = vld [vmem:[%s2503_s29 + $0x28] ss:$16 sps:$4 sm:$0xff]  }
  0xb6   : > { %1203 = vmatpush2.bf16.msra.mxu1 %v1940_v40  ;;  %1163 = vmatprep.subr.bf16.mxu0 %v1941_v41  ;;  %v2024_v38 = vld [vmem:[%s2503_s29 + $0x22c] ss:$16 sps:$4 sm:$0xff]   ;;  %v2022_v40 = vld [vmem:[%s2503_s29 + $0x228] ss:$16 sps:$4 sm:$0xff]  }
  0xb7   : > { %1204 = vmatprep.subr.bf16.mxu1 %v1943_v42  ;;  %v2027_v41 = vld [vmem:[%s2503_s29 + $0xc] ss:$16 sps:$4 sm:$0xff]   ;;  %v2037_v51 = vld [vmem:[%s2503_s29 + $0x1c8] ss:$16 sps:$4 sm:$0xff]  }
  0xb8   : > { %v2030_v42 = vld [vmem:[%s2503_s29 + $0x20c] ss:$16 sps:$4 sm:$0xff]   ;;  %v2043_v55 = vld [vmem:[%s2503_s29 + $0x1a8] ss:$16 sps:$4 sm:$0xff]  }
  0xb9   : > { %1164 = vmatpush2.bf16.msra.mxu0 %v1945_v43  ;;  %v2025_v43 = vld [vmem:[%s2503_s29 + $0x8] ss:$16 sps:$4 sm:$0xff]   ;;  %v2075_v9 = vld [vmem:[%s2503_s29 + $0x10c] ss:$16 sps:$4 sm:$0xff]  }
  0xba   : > { %1205 = vmatpush2.bf16.msra.mxu1 %v1946_v44  ;;  %1165 = vmatprep.subr.bf16.mxu0 %v1947_v45  ;;  %v2028_v44 = vld [vmem:[%s2503_s29 + $0x208] ss:$16 sps:$4 sm:$0xff]   ;;  %v2033_v45 = vld [vmem:[%s2503_s29 + $0x1ec] ss:$16 sps:$4 sm:$0xff]  }
  0xbb   : > { %1206 = vmatprep.subr.bf16.mxu1 %v1949_v46  ;;  %v2036_v46 = vld [vmem:[%s2503_s29 + $0x3ec] ss:$16 sps:$4 sm:$0xff]  }
  0xbc   : > { %v2078_v10 = vld [vmem:[%s2503_s29 + $0x30c] ss:$16 sps:$4 sm:$0xff]  }
  0xbd   : > { %1166 = vmatpush2.bf16.msra.mxu0 %v1951_v47  ;;  %v2031_v47 = vld [vmem:[%s2503_s29 + $0x1e8] ss:$16 sps:$4 sm:$0xff]  }
  0xbe   : > { %1207 = vmatpush2.bf16.msra.mxu1 %v1952_v48  ;;  %1167 = vmatprep.subr.bf16.mxu0 %v1953_v49  ;;  %v2034_v48 = vld [vmem:[%s2503_s29 + $0x3e8] ss:$16 sps:$4 sm:$0xff]   ;;  %v2039_v49 = vld [vmem:[%s2503_s29 + $0x1cc] ss:$16 sps:$4 sm:$0xff]  }
  0xbf   : > { %1208 = vmatprep.subr.bf16.mxu1 %v1955_v50  ;;  %v2042_v50 = vld [vmem:[%s2503_s29 + $0x3cc] ss:$16 sps:$4 sm:$0xff]  }
  0xc1   : > { %1168 = vmatpush2.bf16.msra.mxu0 %v1957_v52  ;;  %v2040_v52 = vld [vmem:[%s2503_s29 + $0x3c8] ss:$16 sps:$4 sm:$0xff]  }
  0xc2   : > { %1209 = vmatpush2.bf16.msra.mxu1 %v1958_v53  ;;  %1169 = vmatprep.subr.bf16.mxu0 %v1959_v56  ;;  %v2045_v53 = vld [vmem:[%s2503_s29 + $0x1ac] ss:$16 sps:$4 sm:$0xff]   ;;  %v2046_v56 = vld [vmem:[%s2503_s29 + $0x3a8] ss:$16 sps:$4 sm:$0xff]  }
  0xc3   : > { %1210 = vmatprep.subr.bf16.mxu1 %v1961_v58  ;;  %v2054_v58 = vld [vmem:[%s2503_s29 + $0x38c] ss:$16 sps:$4 sm:$0xff]  }
  0xc5   : > { %1170 = vmatpush2.bf16.msra.mxu0 %v1963_v59  ;;  %v2049_v59 = vld [vmem:[%s2503_s29 + $0x188] ss:$16 sps:$4 sm:$0xff]  }
  0xc6   : > { %1211 = vmatpush2.bf16.msra.mxu1 %v1964_v60  ;;  %1171 = vmatprep.subr.bf16.mxu0 %v1965_v61  ;;  %v2052_v60 = vld [vmem:[%s2503_s29 + $0x388] ss:$16 sps:$4 sm:$0xff]   ;;  %v2057_v61 = vld [vmem:[%s2503_s29 + $0x16c] ss:$16 sps:$4 sm:$0xff]  }
  0xc7   : > { %1212 = vmatprep.subr.bf16.mxu1 %v1967_v62  ;;  %v2060_v62 = vld [vmem:[%s2503_s29 + $0x36c] ss:$16 sps:$4 sm:$0xff]  }
  0xc9   : > { %1172 = vmatpush2.bf16.msra.mxu0 %v1969_v63  ;;  %v2055_v63 = vld [vmem:[%s2503_s29 + $0x168] ss:$16 sps:$4 sm:$0xff]  }
  0xca   : > { %1213 = vmatpush2.bf16.msra.mxu1 %v1970_v0  ;;  %1173 = vmatprep.subr.bf16.mxu0 %v1971_v1  ;;  %v2058_v0 = vld [vmem:[%s2503_s29 + $0x368] ss:$16 sps:$4 sm:$0xff]   ;;  %v2063_v1 = vld [vmem:[%s2503_s29 + $0x14c] ss:$16 sps:$4 sm:$0xff]  }
  0xcb   : > { %1214 = vmatprep.subr.bf16.mxu1 %v1973_v2  ;;  %v2066_v2 = vld [vmem:[%s2503_s29 + $0x34c] ss:$16 sps:$4 sm:$0xff]  }
  0xcd   : > { %1174 = vmatpush2.bf16.msra.mxu0 %v1975_v3  ;;  %v2061_v3 = vld [vmem:[%s2503_s29 + $0x148] ss:$16 sps:$4 sm:$0xff]  }
  0xce   : > { %1215 = vmatpush2.bf16.msra.mxu1 %v1976_v4  ;;  %1175 = vmatprep.subr.bf16.mxu0 %v1977_v5  ;;  %v2064_v4 = vld [vmem:[%s2503_s29 + $0x348] ss:$16 sps:$4 sm:$0xff]   ;;  %v2069_v5 = vld [vmem:[%s2503_s29 + $0x12c] ss:$16 sps:$4 sm:$0xff]  }
  0xcf   : > { %1216 = vmatprep.subr.bf16.mxu1 %v1979_v6  ;;  %v2072_v6 = vld [vmem:[%s2503_s29 + $0x32c] ss:$16 sps:$4 sm:$0xff]  }
  0xd1   : > { %1176 = vmatpush2.bf16.msra.mxu0 %v1981_v7  ;;  %v2067_v7 = vld [vmem:[%s2503_s29 + $0x128] ss:$16 sps:$4 sm:$0xff]  }
  0xd2   : > { %1217 = vmatpush2.bf16.msra.mxu1 %v1982_v8  ;;  %1227 = vmatprep.subr.bf16.mxu0 %v1985_v11  ;;  %v2070_v8 = vld [vmem:[%s2503_s29 + $0x328] ss:$16 sps:$4 sm:$0xff]  }
  0xd3   : > { %1268 = vmatprep.subr.bf16.mxu1 %v1988_v12  ;;  %v2073_v11 = vld [vmem:[%s2503_s29 + $0x108] ss:$16 sps:$4 sm:$0xff]  }
  0xd4   : > { %1178 = vmatmul.mubr.bf16.vlgmr.msra.gmra.mxu0 %v2592_v13  ;;  %v2076_v12 = vld [vmem:[%s2503_s29 + $0x308] ss:$16 sps:$4 sm:$0xff]  }
  0xd5   : > { %1219 = vmatmul.mubr.bf16.vlgmr.msra.gmra.mxu1 %v2594_v14  ;;  %1228 = vmatpush1.bf16.msra.mxu0 %v1983_v15 }
  0xd6   : > { %1269 = vmatpush1.bf16.msra.mxu1 %v1986_v16  ;;  %1229 = vmatprep.subr.bf16.mxu0 %v1991_v17 }
  0xd7   : > { %1270 = vmatprep.subr.bf16.mxu1 %v1994_v18  ;;  %1259 = vmatprep.mubr.bf16.mxu0 %v2571_v54  ;;  %v2048_v54 = vld [vmem:[%s2503_s29 + $0x3ac] ss:$16 sps:$4 sm:$0xff]  }
  0xd8   : > { %1300 = vmatprep.mubr.bf16.mxu1 %v504_v57  ;;  %v2051_v57 = vld [vmem:[%s2503_s29 + $0x18c] ss:$16 sps:$4 sm:$0xff]  }
  0xd9   : > { %1230 = vmatpush1.bf16.msra.mxu0 %v1989_v19 }
  0xda   : > { %1271 = vmatpush1.bf16.msra.mxu1 %v1992_v20  ;;  %1231 = vmatprep.subr.bf16.mxu0 %v1997_v21 }
  0xdb   : > { %1272 = vmatprep.subr.bf16.mxu1 %v2000_v22 }
  0xdd   : > { %1232 = vmatpush1.bf16.msra.mxu0 %v1995_v23 }
  0xde   : > { %1273 = vmatpush1.bf16.msra.mxu1 %v1998_v24  ;;  %1233 = vmatprep.subr.bf16.mxu0 %v2003_v25 }
  0xdf   : > { %1274 = vmatprep.subr.bf16.mxu1 %v2006_v26 }
  0xe1   : > { %1234 = vmatpush1.bf16.msra.mxu0 %v2001_v27 }
  0xe2   : > { %1275 = vmatpush1.bf16.msra.mxu1 %v2004_v28  ;;  %1235 = vmatprep.subr.bf16.mxu0 %v2009_v29 }
  0xe3   : > { %1276 = vmatprep.subr.bf16.mxu1 %v2012_v30 }
  0xe5   : > { %1236 = vmatpush1.bf16.msra.mxu0 %v2007_v31 }
  0xe6   : > { %1277 = vmatpush1.bf16.msra.mxu1 %v2010_v32  ;;  %1237 = vmatprep.subr.bf16.mxu0 %v2015_v33 }
  0xe7   : > { %1278 = vmatprep.subr.bf16.mxu1 %v2018_v34 }
  0xe9   : > { %1238 = vmatpush1.bf16.msra.mxu0 %v2013_v35 }
  0xea   : > { %1279 = vmatpush1.bf16.msra.mxu1 %v2016_v36  ;;  %1239 = vmatprep.subr.bf16.mxu0 %v2021_v37 }
  0xeb   : > { %1280 = vmatprep.subr.bf16.mxu1 %v2024_v38 }
  0xed   : > { %1240 = vmatpush1.bf16.msra.mxu0 %v2019_v39 }
  0xee   : > { %1281 = vmatpush1.bf16.msra.mxu1 %v2022_v40  ;;  %1241 = vmatprep.subr.bf16.mxu0 %v2027_v41 }
  0xef   : > { %1282 = vmatprep.subr.bf16.mxu1 %v2030_v42 }
  0xf1   : > { %1242 = vmatpush1.bf16.msra.mxu0 %v2025_v43 }
  0xf2   : > { %1283 = vmatpush1.bf16.msra.mxu1 %v2028_v44  ;;  %1243 = vmatprep.subr.bf16.mxu0 %v2033_v45 }
  0xf3   : > { %1284 = vmatprep.subr.bf16.mxu1 %v2036_v46 }
  0xf5   : > { %1244 = vmatpush2.bf16.msra.mxu0 %v2031_v47 }
  0xf6   : > { %1285 = vmatpush2.bf16.msra.mxu1 %v2034_v48  ;;  %1245 = vmatprep.subr.bf16.mxu0 %v2039_v49 }
  0xf7   : > { %1286 = vmatprep.subr.bf16.mxu1 %v2042_v50 }
  0xf9   : > { %1246 = vmatpush2.bf16.msra.mxu0 %v2037_v51 }
  0xfa   : > { %1287 = vmatpush2.bf16.msra.mxu1 %v2040_v52  ;;  %1247 = vmatprep.subr.bf16.mxu0 %v2045_v53 }
  0xfb   : > { %1288 = vmatprep.subr.bf16.mxu1 %v2048_v54 }
  0xfd   : > { %1248 = vmatpush2.bf16.msra.mxu0 %v2043_v55 }
  0xfe   : > { %1289 = vmatpush2.bf16.msra.mxu1 %v2046_v56  ;;  %1249 = vmatprep.subr.bf16.mxu0 %v2051_v57 }
  0xff   : > { %1290 = vmatprep.subr.bf16.mxu1 %v2054_v58 }
 0x101   : > { %1250 = vmatpush2.bf16.msra.mxu0 %v2049_v59 }
 0x102   : > { %1291 = vmatpush2.bf16.msra.mxu1 %v2052_v60  ;;  %1251 = vmatprep.subr.bf16.mxu0 %v2057_v61 }
 0x103   : > { %1292 = vmatprep.subr.bf16.mxu1 %v2060_v62 }
 0x105   : > { %1252 = vmatpush2.bf16.msra.mxu0 %v2055_v63 }
 0x106   : > { %1293 = vmatpush2.bf16.msra.mxu1 %v2058_v0  ;;  %1253 = vmatprep.subr.bf16.mxu0 %v2063_v1 }
 0x107   : > { %1294 = vmatprep.subr.bf16.mxu1 %v2066_v2 }
 0x109   : > { %1254 = vmatpush2.bf16.msra.mxu0 %v2061_v3 }
 0x10a   : > { %1295 = vmatpush2.bf16.msra.mxu1 %v2064_v4  ;;  %1255 = vmatprep.subr.bf16.mxu0 %v2069_v5 }
 0x10b   : > { %1296 = vmatprep.subr.bf16.mxu1 %v2072_v6 }
 0x10d   : > { %1256 = vmatpush2.bf16.msra.mxu0 %v2067_v7 }
 0x10e   : > { %1297 = vmatpush2.bf16.msra.mxu1 %v2070_v8  ;;  %1257 = vmatprep.subr.bf16.mxu0 %v2075_v9 }
 0x10f   : > { %1298 = vmatprep.subr.bf16.mxu1 %v2078_v10 }
 0x111   : > { %1258 = vmatpush2.bf16.msra.mxu0 %v2073_v11 }
 0x112   : > { %1299 = vmatpush2.bf16.msra.mxu1 %v2076_v12 }
 0x114   : > { %1260 = vmatmul.mubr.bf16.vlgmr.msra.gmra.mxu0 %v2592_v13 }
 0x115   : > { %1301 = vmatmul.mubr.bf16.vlgmr.msra.gmra.mxu1 %v2594_v14 }
 0x194   : > { %v1179_v15 = vpop.f32.mrf.mxu0 }
 0x195   : > { %v1220_v16 = vpop.f32.mrf.mxu1 }
 0x196   : > { %v2663_v17 = vadd.f32 %v1220_v16, %v1179_v15  ;;  %v1181_v18 = vpop.f32.mrf.mxu0 }
 0x197   : > { %v1222_v19 = vpop.f32.mrf.mxu1 }
 0x198   : > { %v1309_v20 = vrot.slane %v2663_v17, 4  ;;  %v1338_v21 = vmul.f32 %v2663_v17, %v2663_v17  ;;  %v2668_v22 = vadd.f32 %v1222_v19, %v1181_v18  ;;  %v1183_v23 = vpop.f32.mrf.mxu0 }
 0x199   : > { %v1224_v24 = vpop.f32.mrf.mxu1 }
 0x19a   : > { %v1310_v25 = vadd.f32 %v1309_v20, %v2663_v17  ;;  %v1342_v13 = vrot.slane %v1338_v21, 4  ;;  %v1315_v14 = vrot.slane %v2668_v22, 4  ;;  %v1339_v26 = vmul.f32 %v2668_v22, %v2668_v22  ;;  %v1184_v27 = vpop.f32.mrf.mxu0 }
 0x19b   : > { %v1225_v28 = vpop.f32.mrf.mxu1 }
 0x19c   : > { %v1311_v29 = vrot.slane %v1310_v25, 2  ;;  %v1343_v30 = vadd.f32 %v1342_v13, %v1338_v21  ;;  %v1316_v31 = vadd.f32 %v1315_v14, %v2668_v22  ;;  %v1348_v32 = vrot.slane %v1339_v26, 4 }
 0x19e   : > { %v1312_v33 = vadd.f32 %v1311_v29, %v1310_v25  ;;  %v1344_v34 = vrot.slane %v1343_v30, 2  ;;  %v1317_v35 = vrot.slane %v1316_v31, 2  ;;  %v1349_v36 = vadd.f32 %v1348_v32, %v1339_v26 }
 0x1a0   : > { %v1313_v37 = vrot.slane %v1312_v33, 1  ;;  %v1345_v38 = vadd.f32 %v1344_v34, %v1343_v30  ;;  %v1318_v39 = vadd.f32 %v1317_v35, %v1316_v31  ;;  %v1350_v40 = vrot.slane %v1349_v36, 2 }
 0x1a2   : > { %v1314_v41 = vadd.f32 %v1313_v37, %v1312_v33  ;;  %v1346_v42 = vrot.slane %v1345_v38, 1  ;;  %v1319_v43 = vrot.slane %v1318_v39, 1  ;;  %v1351_v44 = vadd.f32 %v1350_v40, %v1349_v36 }
 0x1a4   : > { %v2675_v45 = vmul.f32 0.125, %v1314_v41  ;;  %v1347_v46 = vadd.f32 %v1346_v42, %v1345_v38  ;;  %v1320_v47 = vadd.f32 %v1319_v43, %v1318_v39  ;;  %v1352_v48 = vrot.slane %v1351_v44, 1 }
 0x1a6   : > { %v1366_v49 = vmul.f32 0.125, %v1347_v46  ;;  %v1370_v50 = vmul.f32 %v2675_v45, %v2675_v45  ;;  %v2679_v51 = vmul.f32 0.125, %v1320_v47  ;;  %v1353_v52 = vadd.f32 %v1352_v48, %v1351_v44 }
 0x1a7   : > { %v2278_v47 = vmov 1966171168  }
 0x1a8   : > { %v1374_v53 = vsub.f32 %v1366_v49, %v1370_v50  ;;  %v1367_v54 = vmul.f32 0.125, %v1353_v52  ;;  %v1371_v55 = vmul.f32 %v2679_v51, %v2679_v51  ;;  %v1394_v48 = vunpack.c.l.s4 %v2278_v47 }
 0x1a9   : > { %v1396_v49 = vlaneseq }
 0x1aa   : > { %v1379_v56 = vadd.f32 1e-05, %v1374_v53  ;;  %v1375_v57 = vsub.f32 %v1367_v54, %v1371_v55  ;;  %v1395_v50 = vunpack.c.0.s8 %v1394_v48 }
 0x1ab   : > { %v1397_v52 = vshrl.u32 %v1396_v49, 7 }
 0x1ac   : > { %v1380_v58 = vadd.f32 1e-05, %v1375_v57  ;;  %2079 = vrsqrt.f32 %v1379_v56 }
 0x1ad   : > { %v1398_v54 = vsub.s32 %v1395_v50, %v1397_v52 }
 0x1ae   : > { %2081 = vrsqrt.f32 %v1380_v58 }
 0x1b9   : > { %v2080_v59 = vpop.eup %2079 }
 0x1bb   : > { %v2082_v60 = vpop.eup %2081 }
 0x1bc   : > { %v1391_v61 = vcombine.low %v2080_v59, %v2082_v60  ;;  %v1378_v60 = vld [vmem:[%s310_s14] sm:$0xf] }
 0x1be   : > { %v1399_v57 = vrot.slane %v1391_v61, %v1398_v54 }
 0x1d4   : > { %v1261_v62 = vpop.f32.mrf.mxu0 }
 0x1d5   : > { %v1302_v63 = vpop.f32.mrf.mxu1 }
 0x1d6   : > { %v2683_v0 = vadd.f32 %v1302_v63, %v1261_v62  ;;  %v1263_v1 = vpop.f32.mrf.mxu0  ;;  %v1421_v62 = vsub.s32 0, %v1397_v52 }
 0x1d7   : > { %v1304_v2 = vpop.f32.mrf.mxu1 }
 0x1d8   : > { %v1321_v3 = vrot.slane %v2683_v0, 4  ;;  %v1340_v4 = vmul.f32 %v2683_v0, %v2683_v0  ;;  %v2688_v5 = vadd.f32 %v1304_v2, %v1263_v1  ;;  %v1265_v6 = vpop.f32.mrf.mxu0  ;;  %v1425_v1 = vsub.s32 1, %v1397_v52 }
 0x1d9   : > { %v1306_v7 = vpop.f32.mrf.mxu1  ;;  %v1429_v2 = vsub.s32 2, %v1397_v52 }
 0x1da   : > { %v1322_v8 = vadd.f32 %v1321_v3, %v2683_v0  ;;  %v1354_v9 = vrot.slane %v1340_v4, 4  ;;  %v1327_v10 = vrot.slane %v2688_v5, 4  ;;  %v1341_v11 = vmul.f32 %v2688_v5, %v2688_v5  ;;  %v1266_v12 = vpop.f32.mrf.mxu0 }
 0x1db   : > { %v1307_v15 = vpop.f32.mrf.mxu1  ;;  %v1433_v3 = vsub.s32 3, %v1397_v52 }
 0x1dc   : > { %v1323_v16 = vrot.slane %v1322_v8, 2  ;;  %v1355_v18 = vadd.f32 %v1354_v9, %v1340_v4  ;;  %v1328_v19 = vadd.f32 %v1327_v10, %v2688_v5  ;;  %v1360_v20 = vrot.slane %v1341_v11, 4 }
 0x1de   : > { %v1324_v21 = vadd.f32 %v1323_v16, %v1322_v8  ;;  %v1356_v23 = vrot.slane %v1355_v18, 2  ;;  %v1329_v24 = vrot.slane %v1328_v19, 2  ;;  %v1361_v25 = vadd.f32 %v1360_v20, %v1341_v11 }
 0x1e0   : > { %v1325_v13 = vrot.slane %v1324_v21, 1  ;;  %v1357_v14 = vadd.f32 %v1356_v23, %v1355_v18  ;;  %v1330_v26 = vadd.f32 %v1329_v24, %v1328_v19  ;;  %v1362_v27 = vrot.slane %v1361_v25, 2  ;;  %v1417_v24 = vld [vmem:[%s319_s22] sm:$0xf] }
 0x1e2   : > { %v1326_v28 = vadd.f32 %v1325_v13, %v1324_v21  ;;  %v1358_v29 = vrot.slane %v1357_v14, 1  ;;  %v1331_v30 = vrot.slane %v1330_v26, 1  ;;  %v1363_v31 = vadd.f32 %v1362_v27, %v1361_v25 }
 0x1e4   : > { %v1336_v32 = vmul.f32 0.125, %v1326_v28  ;;  %v1359_v33 = vadd.f32 %v1358_v29, %v1357_v14  ;;  %v1332_v34 = vadd.f32 %v1331_v30, %v1330_v26  ;;  %v1364_v35 = vrot.slane %v1363_v31, 1 }
 0x1e6   : > { %v1368_v36 = vmul.f32 0.125, %v1359_v33  ;;  %v1372_v37 = vmul.f32 %v1336_v32, %v1336_v32  ;;  %v1337_v38 = vmul.f32 0.125, %v1332_v34  ;;  %v1365_v39 = vadd.f32 %v1364_v35, %v1363_v31 }
 0x1e8   : > { %v1376_v40 = vsub.f32 %v1368_v36, %v1372_v37  ;;  %v1369_v41 = vmul.f32 0.125, %v1365_v39  ;;  %v1373_v42 = vmul.f32 %v1337_v38, %v1337_v38 }
 0x1ea   : > { %v1381_v43 = vadd.f32 1e-05, %v1376_v40  ;;  %v1377_v44 = vsub.f32 %v1369_v41, %v1373_v42 }
 0x1ec   : > { %v1382_v46 = vadd.f32 1e-05, %v1377_v44  ;;  %2083 = vrsqrt.f32 %v1381_v43 }
 0x1ee   : > { %2085 = vrsqrt.f32 %v1382_v46 }
 0x1f9   : > { %v2084_v53 = vpop.eup %2083 }
 0x1fb   : > { %v2086_v55 = vpop.eup %2085 }
 0x1fc   : > { %v1392_v56 = vcombine.low %v2084_v53, %v2086_v55 }
 0x1fe   : > { %v1406_v58 = vrot.slane %v1392_v56, %v1398_v54 }
 0x200   : > { %v1407_v59 = vcombine.low %v1399_v57, %v1406_v58 }
 0x202   : > { %v1414_v63 = vrot.slane %v1407_v59, %v1398_v54 }
 0x204   : > { %v1416_v4 = vmul.f32 %v1414_v63, %v1378_v60 }
 0x206   : > { %v1422_v6 = vrot.slane %v1416_v4, %v1421_v62  ;;  %v1426_v7 = vrot.slane %v1416_v4, %v1425_v1  ;;  %v1430_v8 = vrot.slane %v1416_v4, %v1429_v2  ;;  %v1434_v9 = vrot.slane %v1416_v4, %v1433_v3 }
 0x208   : > { %v1439_v10 = vmul.f32 %v1422_v6, %v2675_v45  ;;  %v1440_v11 = vmul.f32 %v1426_v7, %v2679_v51  ;;  %v1441_v61 = vmul.f32 %v1430_v8, %v1336_v32  ;;  %v1442_v12 = vmul.f32 %v1434_v9, %v1337_v38 }
 0x209   : > { %v1473_v15 = vmul.f32 %v1422_v6, %v2663_v17  ;;  %v1474_v16 = vmul.f32 %v1426_v7, %v2668_v22  ;;  %v1475_v14 = vmul.f32 %v1430_v8, %v2683_v0  ;;  %v1476_v45 = vmul.f32 %v1434_v9, %v2688_v5 }
 0x20a   : > { %v1447_v18 = vcombine.low %v1439_v10, %v1440_v11  ;;  %v1448_v19 = vcombine.low %v1441_v61, %v1442_v12 }
 0x20c   : > { %v1455_v20 = vrot.slane %v1447_v18, %v1398_v54  ;;  %v1462_v21 = vrot.slane %v1448_v19, %v1398_v54 }
 0x20e   : > { %v1463_v23 = vcombine.low %v1455_v20, %v1462_v21 }
 0x210   : > { %v1470_v25 = vrot.slane %v1463_v23, %v1398_v54 }
 0x212   : > { %v1472_v13 = vsub.f32 %v1417_v24, %v1470_v25 }
 0x214   : > { %v1481_v51 = vrot.slane %v1472_v13, %v1421_v62  ;;  %v1485_v26 = vrot.slane %v1472_v13, %v1425_v1  ;;  %v1489_v27 = vrot.slane %v1472_v13, %v1429_v2  ;;  %v1493_v28 = vrot.slane %v1472_v13, %v1433_v3 }
 0x216   : > { %v1498_v17 = vadd.f32 %v1481_v51, %v1473_v15  ;;  %v1499_v29 = vadd.f32 %v1485_v26, %v1474_v16  ;;  %v1500_v22 = vadd.f32 %v1489_v27, %v1475_v14  ;;  %v1501_v30 = vadd.f32 %v1493_v28, %v1476_v45 }
 0x217   : > { %1513 = sbr.rel (%p1807_p3) target bundleno = 692 (0x2b4), region = 72 }
 0x218   : > { %v1502_v31 = vmax.f32 %v1498_v17, 0.0  ;;  %v1503_v32 = vmax.f32 %v1499_v29, 0.0  ;;  %v1504_v33 = vmax.f32 %v1500_v22, 0.0  ;;  %v1505_v34 = vmax.f32 %v1501_v30, 0.0 }
 0x21a   : > { %1506 = vst [vmem:[#allocation2 + $0x10] sm:$0xff] %v1502_v31  ;;  %1507 = vst [vmem:[#allocation2] sm:$0xff] %v1503_v32 }
 0x21b   : > { %1508 = vst [vmem:[#allocation2 + $0x18] sm:$0xff] %v1504_v33  ;;  %1509 = vst [vmem:[#allocation2 + $0x8] sm:$0xff] %v1505_v34 }
 0x21c   : > { %v1514_v0 = vld [vmem:[#allocation11] sm:$0xf]  ;;  %v1808_v46 = vld [vmem:[#allocation3] ss:$0 sm:$0xff]  ;;  %vm1553_vm0 = vcmask 7168  }
 0x21d   : > { %v1519_v5 = vrot.slane %v1514_v0, %v1421_v62  ;;  %v1523_v35 = vrot.slane %v1514_v0, %v1425_v1  ;;  %v1527_v36 = vrot.slane %v1514_v0, %v1429_v2  ;;  %v1531_v37 = vrot.slane %v1514_v0, %v1433_v3 }
 0x21f   : > { %v1536_v38 = vmul.f32 %v1519_v5, %v1502_v31  ;;  %v1537_v39 = vmul.f32 %v1523_v35, %v1503_v32  ;;  %v1538_v40 = vmul.f32 %v1527_v36, %v1504_v33  ;;  %v1539_v41 = vmul.f32 %v1531_v37, %v1505_v34 }
 0x221   : > { %v1540_v42 = vadd.f32 %v1537_v39, %v1536_v38 }
 0x223   : > { %v1541_v43 = vadd.f32 %v1540_v42, %v1538_v40 }
 0x225   : > { %v1542_v44 = vadd.f32 %v1541_v43, %v1539_v41 }
 0x227   : > { %1543 = vadd.xlane.f32.xlu0 %v1542_v44 }
 0x2b0   : > { %v1544_v47 = vpop.xlane.xlu0 %1543 }
 0x2b1   : > { %v1552_v48 = vadd.f32 %v1808_v46, %v1544_v47 }
 0x2b3   : > { %1554 = vst.msk [vmem:[%s2728_s6] sm:$0xff] %vm1553_vm0, %v1552_v48 }
 0x2b4 PF: > { %p22_p6 = scmp.ge.s32.totalorder %s2339_s27, 6   ;;  %s2752_s23 = smov %s2261_s24 }
 0x2b5   : > { %s2753_s24 = smov %s2265_s25  ;;  %s2754_s25 = smov %s2349_s30 }
 0x2b6   : > { %s2755_s26 = smov %s2339_s27  ;;  %24 = sbr.rel (!%p22_p6) target bundleno = 9 (0x9), region = 121 }
 0x2bb   :  { %1566 = vsyncpa [#allocation5], 1 }
 0x2bc   :  { %1568 = vsyncpa [#allocation5 + $0x1], 1 }
 0x2bd   :  { %1569 = vsyncpa [#allocation7], 1 }
 0x2be   :  { %1571 = vsyncpa [#allocation7 + $0x1], 1 }
 0x2bf   :  { %1572 = vsyncpa [#allocation10], 1 }
 0x2c0   :  { %1574 = vsyncpa [#allocation10 + $0x1], 1 }

</bundles_post_ra>
